<compile_context>
chip_gen: v5e
topology: v5e:2x2
jax: 0.10.0
libtpu: 0.0.40
codegen_flags: <defaults>
</compile_context>

<pallas_src>
import functools

import jax
import jax.numpy as jnp
from jax.experimental import pallas as pl
from jax.experimental.pallas import tpu as pltpu

LANE = 128


def _round_up(x, m):
    return ((x + m - 1) // m) * m


def _disc_kernel(n_layers, x_ref, w_ref, b_ref, out_ref):
    """Fused MLP forward on one (TB, K) activation tile.

    x_ref:   (TB, K)            activation tile (zero-padded features)
    w_ref:   (n_layers, K, K)   zero-padded weight slab, layer l = w_ref[l]
    b_ref:   (n_layers, K)      zero-padded bias slab
    out_ref: (TB, K)            lane-dense output (only column 0 is meaningful)
    """
    h = x_ref[...]
    for li in range(n_layers):
        w = w_ref[li]                        # (K, K), static index
        b = b_ref[li:li + 1, :]              # (1, K)
        h = jnp.dot(h, w, preferred_element_type=jnp.float32) + b
        if li < n_layers - 1:
            # LeakyReLU(negative_slope=0.2); Dropout(0.5) is identity in eval mode.
            h = jnp.maximum(h, 0.2 * h)
    out_ref[...] = h.astype(out_ref.dtype)


def _pack_params(params, K):
    """Pack list of (W (in,out), b (out,)) into zero-padded slabs."""
    n_layers = len(params)
    w_slab = jnp.zeros((n_layers, K, K), jnp.float32)
    b_slab = jnp.zeros((n_layers, K), jnp.float32)
    for li, (w, b) in enumerate(params):
        in_d, out_d = w.shape
        w_slab = w_slab.at[li, :in_d, :out_d].set(w.astype(jnp.float32))
        b_slab = b_slab.at[li, :out_d].set(b.astype(jnp.float32))
    return w_slab, b_slab


def discriminator_forward(x, params):
    """x: (B, image_size) float32.  params: list of (W (in,out), b (out,))."""
    B, D = x.shape
    n_layers = len(params)

    dims = [D] + [w.shape[1] for (w, _) in params]
    K = _round_up(max(max(dims), 1), LANE)          # lane-rounded feature width

    w_slab, b_slab = _pack_params(params, K)

    # Batch tiling: small batches -> one step; large batches -> 512-row tiles.
    TB = min(512, _round_up(B, 8))
    B_pad = _round_up(B, TB)
    x_pad = jnp.zeros((B_pad, K), jnp.float32).at[:B, :D].set(
        x.astype(jnp.float32))

    grid = (B_pad // TB,)
    kernel = functools.partial(_disc_kernel, n_layers)

    out = pl.pallas_call(
        kernel,
        out_shape=jax.ShapeDtypeStruct((B_pad, K), jnp.float32),
        grid=grid,
        in_specs=[
            pl.BlockSpec((TB, K), lambda i: (i, 0)),             # activations
            pl.BlockSpec((n_layers, K, K), lambda i: (0, 0, 0)),  # weight slab
            pl.BlockSpec((n_layers, K), lambda i: (0, 0)),        # bias slab
        ],
        out_specs=pl.BlockSpec((TB, K), lambda i: (i, 0)),
        compiler_params=pltpu.CompilerParams(
            dimension_semantics=("parallel",)),
    )(x_pad, w_slab, b_slab)

    return out[:B, :1]


def init_params(key, image_size, dis_dims):
    """Deterministic init of the MLP parameters (shapes from the nn.Module)."""
    params = []
    dim = image_size
    dims = list(dis_dims) + [1]
    for out_dim in dims:
        key, kw, kb = jax.random.split(key, 3)
        bound = 1.0 / jnp.sqrt(jnp.float32(dim))
        w = jax.random.uniform(kw, (dim, out_dim), jnp.float32, -bound, bound)
        b = jax.random.uniform(kb, (out_dim,), jnp.float32, -bound, bound)
        params.append((w, b))
        dim = out_dim
    return params


if __name__ == "__main__":
    # config.data.image_size = 16, config.model.dis_dims = (32, 32)
    image_size = 16
    dis_dims = (32, 32)
    batch = 8

    key = jax.random.PRNGKey(0)
    key, kx = jax.random.split(key)
    x = jax.random.normal(kx, (batch, image_size), jnp.float32)

    params = init_params(key, image_size, dis_dims)

    out = discriminator_forward(x, params)
    out = jax.block_until_ready(out)

    # Reference check in plain JAX (eval-mode: dropout = identity).
    h = x
    for i, (w, b) in enumerate(params):
        h = h @ w + b
        if i < len(params) - 1:
            h = jnp.where(h > 0, h, 0.2 * h)

    assert out.shape == (batch, 1)
    assert jnp.allclose(out, h, atol=1e-5, rtol=1e-5)

    print("KERNEL_OK")
</pallas_src>

<mosaic_0001>
module attributes {stable_mosaic.version = 11 : i64} {
  func.func @_disc_kernel(%arg0: i32, %arg1: memref<8x128xf32, #tpu.memory_space<vmem>>, %arg2: memref<3x128x128xf32, #tpu.memory_space<vmem>>, %arg3: memref<3x128xf32, #tpu.memory_space<vmem>>, %arg4: memref<8x128xf32, #tpu.memory_space<vmem>>) attributes {dimension_semantics = [#tpu.dimension_semantics<parallel>], iteration_bounds = array<i64: 1>, scalar_prefetch = 0 : i64, scratch_operands = 0 : i64, tpu.core_type = #tpu.core_type<tc>, window_params = [{transform_indices = @transform_0, window_bounds = array<i64: 8, 128>}, {pipeline_mode = #tpu.pipeline_mode<synchronous>, transform_indices = @transform_1, window_bounds = array<i64: 3, 128, 128>}, {pipeline_mode = #tpu.pipeline_mode<synchronous>, transform_indices = @transform_2, window_bounds = array<i64: 3, 128>}, {transform_indices = @transform_3, window_bounds = array<i64: 8, 128>}]} {
    %c0 = arith.constant 0 : index
    %c0_0 = arith.constant 0 : index
    %0 = vector.load %arg1[%c0, %c0_0] : memref<8x128xf32, #tpu.memory_space<vmem>>, vector<8x128xf32>
    %c0_1 = arith.constant 0 : index
    %c0_2 = arith.constant 0 : index
    %c0_3 = arith.constant 0 : index
    %1 = vector.load %arg2[%c0_1, %c0_2, %c0_3] : memref<3x128x128xf32, #tpu.memory_space<vmem>>, vector<1x128x128xf32>
    %2 = vector.shape_cast %1 : vector<1x128x128xf32> to vector<128x128xf32>
    %c0_4 = arith.constant 0 : index
    %c0_5 = arith.constant 0 : index
    %3 = vector.load %arg3[%c0_4, %c0_5] : memref<3x128xf32, #tpu.memory_space<vmem>>, vector<1x128xf32>
    %cst = arith.constant dense<0.000000e+00> : vector<8x128xf32>
    %4 = tpu.matmul %0, %2, %cst {dimension_numbers = #tpu.dot_dimension_numbers<[1], [0], [0], [1], [0, 0, 1, 1], [], []>} : vector<8x128xf32>, vector<128x128xf32>, vector<8x128xf32> -> vector<8x128xf32>
    %5 = vector.broadcast %3 : vector<1x128xf32> to vector<8x128xf32>
    %6 = arith.addf %4, %5 : vector<8x128xf32>
    %cst_6 = arith.constant 2.000000e-01 : f32
    %7 = vector.broadcast %cst_6 : f32 to vector<8x128xf32>
    %8 = arith.mulf %7, %6 : vector<8x128xf32>
    %9 = arith.maximumf %6, %8 : vector<8x128xf32>
    %c1 = arith.constant 1 : index
    %c0_7 = arith.constant 0 : index
    %c0_8 = arith.constant 0 : index
    %10 = vector.load %arg2[%c1, %c0_7, %c0_8] : memref<3x128x128xf32, #tpu.memory_space<vmem>>, vector<1x128x128xf32>
    %11 = vector.shape_cast %10 : vector<1x128x128xf32> to vector<128x128xf32>
    %c1_9 = arith.constant 1 : index
    %c0_10 = arith.constant 0 : index
    %12 = vector.load %arg3[%c1_9, %c0_10] : memref<3x128xf32, #tpu.memory_space<vmem>>, vector<1x128xf32>
    %cst_11 = arith.constant dense<0.000000e+00> : vector<8x128xf32>
    %13 = tpu.matmul %9, %11, %cst_11 {dimension_numbers = #tpu.dot_dimension_numbers<[1], [0], [0], [1], [0, 0, 1, 1], [], []>} : vector<8x128xf32>, vector<128x128xf32>, vector<8x128xf32> -> vector<8x128xf32>
    %14 = vector.broadcast %12 : vector<1x128xf32> to vector<8x128xf32>
    %15 = arith.addf %13, %14 : vector<8x128xf32>
    %cst_12 = arith.constant 2.000000e-01 : f32
    %16 = vector.broadcast %cst_12 : f32 to vector<8x128xf32>
    %17 = arith.mulf %16, %15 : vector<8x128xf32>
    %18 = arith.maximumf %15, %17 : vector<8x128xf32>
    %c2 = arith.constant 2 : index
    %c0_13 = arith.constant 0 : index
    %c0_14 = arith.constant 0 : index
    %19 = vector.load %arg2[%c2, %c0_13, %c0_14] : memref<3x128x128xf32, #tpu.memory_space<vmem>>, vector<1x128x128xf32>
    %20 = vector.shape_cast %19 : vector<1x128x128xf32> to vector<128x128xf32>
    %c2_15 = arith.constant 2 : index
    %c0_16 = arith.constant 0 : index
    %21 = vector.load %arg3[%c2_15, %c0_16] : memref<3x128xf32, #tpu.memory_space<vmem>>, vector<1x128xf32>
    %cst_17 = arith.constant dense<0.000000e+00> : vector<8x128xf32>
    %22 = tpu.matmul %18, %20, %cst_17 {dimension_numbers = #tpu.dot_dimension_numbers<[1], [0], [0], [1], [0, 0, 1, 1], [], []>} : vector<8x128xf32>, vector<128x128xf32>, vector<8x128xf32> -> vector<8x128xf32>
    %23 = vector.broadcast %21 : vector<1x128xf32> to vector<8x128xf32>
    %24 = arith.addf %22, %23 : vector<8x128xf32>
    %c0_18 = arith.constant 0 : index
    %c0_19 = arith.constant 0 : index
    %25 = vector.load %arg4[%c0_18, %c0_19] : memref<8x128xf32, #tpu.memory_space<vmem>>, vector<8x128xf32>
    tpu.vector_store %arg4[%c0_18, %c0_19], %24 {strides = array<i32>} : memref<8x128xf32, #tpu.memory_space<vmem>>, vector<8x128xf32>,
    return
  }
  func.func @transform_0(%arg0: i32) -> (i32, i32) {
    %c0_i32 = arith.constant 0 : i32
    %c0_i32_0 = arith.constant 0 : i32
    return %arg0, %c0_i32 : i32, i32
  }
  func.func @transform_1(%arg0: i32) -> (i32, i32, i32) {
    %c0_i32 = arith.constant 0 : i32
    %c0_i32_0 = arith.constant 0 : i32
    %c0_i32_1 = arith.constant 0 : i32
    %c0_i32_2 = arith.constant 0 : i32
    return %c0_i32, %c0_i32_0, %c0_i32_1 : i32, i32, i32
  }
  func.func @transform_2(%arg0: i32) -> (i32, i32) {
    %c0_i32 = arith.constant 0 : i32
    %c0_i32_0 = arith.constant 0 : i32
    %c0_i32_1 = arith.constant 0 : i32
    return %c0_i32, %c0_i32_0 : i32, i32
  }
  func.func @transform_3(%arg0: i32) -> (i32, i32) {
    %c0_i32 = arith.constant 0 : i32
    %c0_i32_0 = arith.constant 0 : i32
    return %arg0, %c0_i32 : i32, i32
  }
}

</mosaic_0001>

<bundles_post_ra>
// kernel: tpu_custom_call.1
= control target key start
LH: loop header
LB: loop body
LE: loop exit
PB: predicated region body
PF: predicated region fallthrough
CT: control target
= control target key end

     0   :  { %8 = vsyncpa [#allocation3], 0  ;;  %s347_s0 = inlined_call_operand.hbm [shape: f32[8,128], index: 0, kind: input, shape index: {}]   ;;  %s348_s1 = inlined_call_operand.hbm [shape: f32[3,128,128], index: 1, kind: input, shape index: {}]   ;;  %s349_s2 = inlined_call_operand.hbm [shape: f32[3,128], index: 2, kind: input, shape index: {}]   ;;  %s350_s3 = inlined_call_operand.hbm [shape: f32[8,128], index: 3, kind: output, shape index: {}]  }
   0x1   :  { %9 = vsyncpa [#allocation6], 0  ;;  %s26_s14 = sshll.u32 %s348_s1, 4  ;;  %s27_s14 = int_to_ptr.hbm [resolvable:$true] %s26_s14 }
   0x2   :  { %10 = vsyncpa [#allocation4], 0  ;;  %s309_s15 = smov [#allocation5]   ;;  %s16_s19 = sshll.u32 %s347_s0, 4  ;;  %s17_s19 = int_to_ptr.hbm [resolvable:$true] %s16_s19 }
   0x3   :  { %s28_s16 = sshll.u32 %s309_s15, 4  ;;  %s310_s20 = smov 128   ;;  %s29_s16 = int_to_ptr.vmem [resolvable:$true] %s28_s16 }
   0x4   :  { %s311_s21 = smov 8   ;;  %s312_s22 = smov [#allocation2]  }
   0x5   :  { %34 = dma.hbm_to_vmem [thread:$0]  %s27_s14, 6144, %s29_s16, [#allocation6], %s310_s20, %s310_s20, %s311_s21  }
   0x6   :  { %s18_s23 = sshll.u32 %s312_s22, 4  ;;  %s40_s26 = sshll.u32 %s349_s2, 4  ;;  %s19_s23 = int_to_ptr.vmem [resolvable:$true] %s18_s23  ;;  %s41_s26 = int_to_ptr.hbm [resolvable:$true] %s40_s26 }
   0x7   :  { %21 = dma.hbm_to_vmem [thread:$0]  %s17_s19, 128, %s19_s23, [#allocation3]  }
   0x8   :  { %s313_s1 = smov [#allocation7]  }
   0x9   :  { %s42_s27 = sshll.u32 %s313_s1, 4  ;;  %s43_s27 = int_to_ptr.vmem [resolvable:$true] %s42_s27 }
   0xa   :  { %45 = dma.hbm_to_vmem [thread:$0]  %s41_s26, 64, %s43_s27, [#allocation6]  }
   0xb   :  { %303 = dma.done.wait [#allocation3], 128  }
   0xc   :  { %304 = vsyncadd [#allocation3], 4294967168 }
   0xd   :  { %305 = dma.done.wait [#allocation6], 6208  }
   0xe   :  { %306 = vsyncadd [#allocation6], 4294961088  ;;  %v74_v0 = vld [vmem:[#allocation5 + $0x78] sm:$0xff]  ;;  %v73_v1 = vld [vmem:[#allocation5 + $0x70] sm:$0xff]  ;;  %s314_s0 = smov [#allocation8]   ;;  %s187_s30 = sshll.u32 %s350_s3, 4  ;;  %s188_s30 = int_to_ptr.hbm [resolvable:$true] %s187_s30 }
   0xf   :  { %77 = vmatpush.msra.mxu0 %v74_v0  ;;  %v72_v2 = vld [vmem:[#allocation5 + $0x68] sm:$0xff]  ;;  %v71_v3 = vld [vmem:[#allocation5 + $0x60] sm:$0xff]  ;;  %v115_v4 = vld [vmem:[#allocation5 + $0xf8] sm:$0xff]  ;;  %s185_s2 = sshll.u32 %s314_s0, 4  ;;  %s186_s2 = int_to_ptr.vmem [resolvable:$true] %s185_s2 }
  0x10   :  { %v70_v5 = vld [vmem:[#allocation5 + $0x58] sm:$0xff]  ;;  %118 = vmatpush.msra.mxu1 %v115_v4  ;;  %v114_v6 = vld [vmem:[#allocation5 + $0xf0] sm:$0xff]  ;;  %v113_v7 = vld [vmem:[#allocation5 + $0xe8] sm:$0xff] }
  0x11   :  { %78 = vmatpush.msra.mxu0 %v73_v1  ;;  %v69_v8 = vld [vmem:[#allocation5 + $0x50] sm:$0xff]  ;;  %v112_v9 = vld [vmem:[#allocation5 + $0xe0] sm:$0xff]  ;;  %v68_v10 = vld [vmem:[#allocation5 + $0x48] sm:$0xff] }
  0x12   :  { %119 = vmatpush.msra.mxu1 %v114_v6  ;;  %v111_v11 = vld [vmem:[#allocation5 + $0xd8] sm:$0xff]  ;;  %v67_v12 = vld [vmem:[#allocation5 + $0x40] sm:$0xff]  ;;  %v110_v13 = vld [vmem:[#allocation5 + $0xd0] sm:$0xff] }
  0x13   :  { %79 = vmatpush.msra.mxu0 %v72_v2  ;;  %v66_v14 = vld [vmem:[#allocation5 + $0x38] sm:$0xff]  ;;  %v109_v15 = vld [vmem:[#allocation5 + $0xc8] sm:$0xff]  ;;  %v65_v16 = vld [vmem:[#allocation5 + $0x30] sm:$0xff] }
  0x14   :  { %120 = vmatpush.msra.mxu1 %v113_v7  ;;  %v108_v17 = vld [vmem:[#allocation5 + $0xc0] sm:$0xff]  ;;  %v64_v18 = vld [vmem:[#allocation5 + $0x28] sm:$0xff]  ;;  %v107_v19 = vld [vmem:[#allocation5 + $0xb8] sm:$0xff] }
  0x15   :  { %80 = vmatpush.msra.mxu0 %v71_v3  ;;  %v63_v20 = vld [vmem:[#allocation5 + $0x20] sm:$0xff]  ;;  %v106_v21 = vld [vmem:[#allocation5 + $0xb0] sm:$0xff]  ;;  %v62_v22 = vld [vmem:[#allocation5 + $0x18] sm:$0xff] }
  0x16   :  { %121 = vmatpush.msra.mxu1 %v112_v9  ;;  %v105_v23 = vld [vmem:[#allocation5 + $0xa8] sm:$0xff]  ;;  %v61_v24 = vld [vmem:[#allocation5 + $0x10] sm:$0xff]  ;;  %v104_v25 = vld [vmem:[#allocation5 + $0xa0] sm:$0xff] }
  0x17   :  { %81 = vmatpush.msra.mxu0 %v70_v5  ;;  %v60_v26 = vld [vmem:[#allocation5 + $0x8] sm:$0xff]  ;;  %v59_v27 = vld [vmem:[#allocation5] sm:$0xff]  ;;  %v58_v28 = vld [vmem:[#allocation2] sm:$0xff] }
  0x18   :  { %122 = vmatpush.msra.mxu1 %v111_v11  ;;  %v103_v29 = vld [vmem:[#allocation5 + $0x98] sm:$0xff]  ;;  %v102_v30 = vld [vmem:[#allocation5 + $0x90] sm:$0xff]  ;;  %v101_v31 = vld [vmem:[#allocation5 + $0x88] sm:$0xff] }
  0x19   :  { %82 = vmatpush.msra.mxu0 %v69_v8  ;;  %v100_v32 = vld [vmem:[#allocation5 + $0x80] sm:$0xff]  ;;  %v156_v33 = vld [vmem:[#allocation5 + $0x178] sm:$0xff]  ;;  %v155_v34 = vld [vmem:[#allocation5 + $0x170] sm:$0xff] }
  0x1a   :  { %123 = vmatpush.msra.mxu1 %v110_v13  ;;  %159 = vmatpush.msra.mxu2 %v156_v33  ;;  %v154_v35 = vld [vmem:[#allocation5 + $0x168] sm:$0xff]  ;;  %v153_v36 = vld [vmem:[#allocation5 + $0x160] sm:$0xff]  ;;  %v152_v37 = vld [vmem:[#allocation5 + $0x158] sm:$0xff] }
  0x1b   :  { %83 = vmatpush.msra.mxu0 %v68_v10  ;;  %v151_v38 = vld [vmem:[#allocation5 + $0x150] sm:$0xff]  ;;  %v150_v39 = vld [vmem:[#allocation5 + $0x148] sm:$0xff]  ;;  %v149_v40 = vld [vmem:[#allocation5 + $0x140] sm:$0xff] }
  0x1c   :  { %124 = vmatpush.msra.mxu1 %v109_v15  ;;  %160 = vmatpush.msra.mxu2 %v155_v34  ;;  %v148_v41 = vld [vmem:[#allocation5 + $0x138] sm:$0xff]  ;;  %v147_v42 = vld [vmem:[#allocation5 + $0x130] sm:$0xff]  ;;  %v146_v43 = vld [vmem:[#allocation5 + $0x128] sm:$0xff] }
  0x1d   :  { %84 = vmatpush.msra.mxu0 %v67_v12  ;;  %v145_v44 = vld [vmem:[#allocation5 + $0x120] sm:$0xff]  ;;  %v144_v50 = vld [vmem:[#allocation5 + $0x118] sm:$0xff]  ;;  %v143_v51 = vld [vmem:[#allocation5 + $0x110] sm:$0xff] }
  0x1e   :  { %125 = vmatpush.msra.mxu1 %v108_v17  ;;  %161 = vmatpush.msra.mxu2 %v154_v35  ;;  %v204_v45 = vld [vmem:[#allocation7] ss:$0 sm:$0xff]  ;;  %v142_v52 = vld [vmem:[#allocation5 + $0x108] sm:$0xff]  ;;  %v205_v54 = vld [vmem:[#allocation7 + $0x1] ss:$0 sm:$0xff] }
  0x1f   :  { %85 = vmatpush.msra.mxu0 %v66_v14  ;;  %v141_v53 = vld [vmem:[#allocation5 + $0x100] sm:$0xff] }
  0x20   :  { %126 = vmatpush.msra.mxu1 %v107_v19  ;;  %162 = vmatpush.msra.mxu2 %v153_v36  ;;  %v206_v59 = vld [vmem:[#allocation7 + $0x2] ss:$0 sm:$0xff] }
  0x21   :  { %86 = vmatpush.msra.mxu0 %v65_v16 }
  0x22   :  { %127 = vmatpush.msra.mxu1 %v106_v21  ;;  %163 = vmatpush.msra.mxu2 %v152_v37 }
  0x23   :  { %87 = vmatpush.msra.mxu0 %v64_v18 }
  0x24   :  { %128 = vmatpush.msra.mxu1 %v105_v23  ;;  %164 = vmatpush.msra.mxu2 %v151_v38 }
  0x25   :  { %88 = vmatpush.msra.mxu0 %v63_v20 }
  0x26   :  { %129 = vmatpush.msra.mxu1 %v104_v25  ;;  %165 = vmatpush.msra.mxu2 %v150_v39 }
  0x27   :  { %89 = vmatpush.msra.mxu0 %v62_v22 }
  0x28   :  { %130 = vmatpush.msra.mxu1 %v103_v29  ;;  %166 = vmatpush.msra.mxu2 %v149_v40 }
  0x29   :  { %90 = vmatpush.msra.mxu0 %v61_v24 }
  0x2a   :  { %131 = vmatpush.msra.mxu1 %v102_v30  ;;  %167 = vmatpush.msra.mxu2 %v148_v41 }
  0x2b   :  { %91 = vmatpush.msra.mxu0 %v60_v26 }
  0x2c   :  { %132 = vmatpush.msra.mxu1 %v101_v31  ;;  %168 = vmatpush.msra.mxu2 %v147_v42 }
  0x2d   :  { %92 = vmatpush.msra.mxu0 %v59_v27 }
  0x2e   :  { %93 = vmatmul.f32.vlgmr.msra.gmra.mxu0 %v58_v28  ;;  %133 = vmatpush.msra.mxu1 %v100_v32 }
  0x2f   :  { %169 = vmatpush.msra.mxu2 %v146_v43 }
  0x31   :  { %170 = vmatpush.msra.mxu2 %v145_v44 }
  0x33   :  { %171 = vmatpush.msra.mxu2 %v144_v50 }
  0x35   :  { %172 = vmatpush.msra.mxu2 %v143_v51 }
  0x37   :  { %173 = vmatpush.msra.mxu2 %v142_v52 }
  0x39   :  { %174 = vmatpush.msra.mxu2 %v141_v53 }
  0xab   :  { %v94_v46 = vpop.f32.mrf.mxu0 }
  0xac   :  { %v95_v47 = vadd.f32 %v204_v45, %v94_v46 }
  0xae   :  { %v97_v48 = vmul.f32 0.2, %v95_v47 }
  0xb0   :  { %v98_v49 = vmax.f32 %v95_v47, %v97_v48 }
  0xb2   :  { %134 = vmatmul.f32.vlgmr.msra.gmra.mxu1 %v98_v49 }
 0x12f   :  { %v135_v55 = vpop.f32.mrf.mxu1 }
 0x130   :  { %v136_v56 = vadd.f32 %v205_v54, %v135_v55 }
 0x132   :  { %v138_v57 = vmul.f32 0.2, %v136_v56 }
 0x134   :  { %v139_v58 = vmax.f32 %v136_v56, %v138_v57 }
 0x136   :  { %175 = vmatmul.f32.vlgmr.msra.gmra.mxu2 %v139_v58 }
 0x1b9   :  { %v176_v60 = vpop.f32.mrf.mxu2 }
 0x1ba   :  { %v177_v61 = vadd.f32 %v206_v59, %v176_v60 }
 0x1bc   :  { %179 = vst [vmem:[#allocation8] sm:$0xff] %v177_v61 }
 0x1bd   :  { %190 = dma.vmem_to_hbm [thread:$0]  %s186_s2, 128, %s188_s30, [#allocation4]  }
 0x1be   :  { %307 = dma.done.wait [#allocation4], 128  }
 0x1bf   :  { %308 = vsyncadd [#allocation4], 4294967168 }
 0x1c0   :  { %195 = vsyncpa [#allocation3], 1 }
 0x1c1   :  { %196 = vsyncpa [#allocation6], 1 }
 0x1c2   :  { %197 = vsyncpa [#allocation4], 1 }

</bundles_post_ra>
